<compile_context>
chip_gen: v6e
topology: v6e:2x2x1
jax: 0.10.0
libtpu: 0.0.40
codegen_flags: <defaults>
</compile_context>

<pallas_src>
import jax
import jax.numpy as jnp
from jax.experimental import pallas as pl
from jax.experimental.pallas import tpu as pltpu

BN_EPS = 1e-5
_LANE = 128
_VMEM_LIMIT = 60 * 1024 * 1024   # < v7x 64 MiB physical; >> v5e/v6e scoped defaults

# Resident (constant index_map) blocks are fetched once — double buffering them only
# wastes VMEM.  Guarded so the script also runs on JAX versions without pipeline_mode.
_RESIDENT_KW = {"pipeline_mode": pl.Buffered(1)} if hasattr(pl, "Buffered") else {}


def factorized_reduce(x, w1, w2, gamma, beta, *, tile_p=1024,
                      compute_dtype=jnp.bfloat16):
    """FactorizedReduce forward with training-mode (batch) BatchNorm statistics.

    x: (N, C_in, H, W) NCHW.  w1, w2: (C_half, C_in, 1, 1).  gamma, beta: (2*C_half,).
    Returns (N, 2*C_half, Ho, Wo) in x.dtype.
    """
    N, C_in, H, W = x.shape
    C_half = w1.shape[0]
    C_out = 2 * C_half
    Ho = (H - 1) // 2 + 1
    Wo = (W - 1) // 2 + 1
    P = Ho * Wo                      # pixels per image (lane axis inside the kernels)
    M_total = N * P                  # BatchNorm reduces over batch * spatial

    # --- strided gathers, kept channels-first (no layout transpose; bf16 cast fused) ------
    # conv_1 samples x at (0::2, 0::2); conv_2 samples ConstantPad2d((0,1,0,1))(x) at
    # (1::2, 1::2).  Only the small strided result is padded, and only for odd H/W.
    x1 = x[:, :, 0:2 * Ho:2, 0:2 * Wo:2]
    x2 = x[:, :, 1::2, 1::2]
    pad_h, pad_w = Ho - x2.shape[2], Wo - x2.shape[3]
    if pad_h or pad_w:
        x2 = jnp.pad(x2, ((0, 0), (0, 0), (0, pad_h), (0, pad_w)))
    x1f = x1.reshape(N, C_in, P).astype(compute_dtype)       # (N, C_in, P) pixels on lanes
    x2f = x2.reshape(N, C_in, P).astype(compute_dtype)

    # Conv weights in matmul-ready (C_out_half, C_in) orientation.
    w1m = w1.reshape(C_half, C_in).astype(compute_dtype)
    w2m = w2.reshape(C_half, C_in).astype(compute_dtype)

    # --- pixel tiling ----------------------------------------------------------------------
    tile_p = min(tile_p, P)
    if P > _LANE and tile_p % _LANE != 0:
        tile_p = (tile_p // _LANE) * _LANE        # keep lane-dense (unmasked) stores
    grid_p = pl.cdiv(P, tile_p)
    needs_mask = (P % tile_p) != 0                # only the stats reduction needs masking

    # --- BlockSpecs --------------------------------------------------------------------------
    x_spec = pl.BlockSpec((None, C_in, tile_p), lambda n, j: (n, 0, j))
    w_spec = pl.BlockSpec((C_half, C_in), lambda n, j: (0, 0), **_RESIDENT_KW)
    vec_spec = pl.BlockSpec((2, C_half, 1), lambda n, j: (0, 0, 0), **_RESIDENT_KW)
    stat_spec = pl.BlockSpec((None, 2, C_half, 1), lambda n, j: (n, 0, 0, 0))
    out_spec = pl.BlockSpec((None, 2, C_half, tile_p), lambda n, j: (n, 0, 0, j))

    def _mask_tail(y, j):
        lane = jax.lax.broadcasted_iota(jnp.int32, (1, tile_p), 1)
        return jnp.where(j * tile_p + lane < P, y, 0.0)

    # --- pass 1: per-(batch, channel) sum / sum-of-squares (batch axis -> v7x parallelism) --
    def _stats_kernel(x1_ref, x2_ref, w1_ref, w2_ref, sum_ref, sq_ref):
        j = pl.program_id(1)

        @pl.when(j == 0)
        def _():
            sum_ref[...] = jnp.zeros_like(sum_ref)
            sq_ref[...] = jnp.zeros_like(sq_ref)

        y1 = jnp.dot(w1_ref[...], x1_ref[...], preferred_element_type=jnp.float32)
        y2 = jnp.dot(w2_ref[...], x2_ref[...], preferred_element_type=jnp.float32)
        if needs_mask:
            y1 = _mask_tail(y1, j)
            y2 = _mask_tail(y2, j)
        sum_ref[0] += jnp.sum(y1, axis=1, keepdims=True)
        sum_ref[1] += jnp.sum(y2, axis=1, keepdims=True)
        sq_ref[0] += jnp.sum(y1 * y1, axis=1, keepdims=True)
        sq_ref[1] += jnp.sum(y2 * y2, axis=1, keepdims=True)

    ssum, ssq = pl.pallas_call(
        _stats_kernel,
        grid=(N, grid_p),
        in_specs=[x_spec, x_spec, w_spec, w_spec],
        out_specs=[stat_spec, stat_spec],
        out_shape=[jax.ShapeDtypeStruct((N, 2, C_half, 1), jnp.float32),
                   jax.ShapeDtypeStruct((N, 2, C_half, 1), jnp.float32)],
        compiler_params=pltpu.CompilerParams(
            dimension_semantics=("parallel", "arbitrary"),
            vmem_limit_bytes=_VMEM_LIMIT),
    )(x1f, x2f, w1m, w2m)

    # --- tiny f32 glue: reduce batch partials, fold BN into one scale/shift per channel -----
    inv_m = 1.0 / float(M_total)
    mean = jnp.sum(ssum, axis=0) * inv_m                               # (2, C_half, 1)
    var = jnp.maximum(jnp.sum(ssq, axis=0) * inv_m - mean * mean, 0.0)
    inv_std = jax.lax.rsqrt(var + BN_EPS)
    gamma2 = gamma.astype(jnp.float32).reshape(2, C_half, 1)           # [conv_1 | conv_2] halves
    beta2 = beta.astype(jnp.float32).reshape(2, C_half, 1)
    scale = gamma2 * inv_std
    shift = beta2 - mean * scale

    # --- pass 2: recompute the cheap matmul, apply one fused multiply-add (lane-dense store) -
    def _apply_kernel(x1_ref, x2_ref, w1_ref, w2_ref, scale_ref, shift_ref, o_ref):
        y1 = jnp.dot(w1_ref[...], x1_ref[...], preferred_element_type=jnp.float32)
        y2 = jnp.dot(w2_ref[...], x2_ref[...], preferred_element_type=jnp.float32)
        o_ref[0] = (y1 * scale_ref[0] + shift_ref[0]).astype(o_ref.dtype)
        o_ref[1] = (y2 * scale_ref[1] + shift_ref[1]).astype(o_ref.dtype)

    out4 = pl.pallas_call(
        _apply_kernel,
        grid=(N, grid_p),
        in_specs=[x_spec, x_spec, w_spec, w_spec, vec_spec, vec_spec],
        out_specs=out_spec,
        out_shape=jax.ShapeDtypeStruct((N, 2, C_half, P), x.dtype),
        compiler_params=pltpu.CompilerParams(
            dimension_semantics=("parallel", "parallel"),
            vmem_limit_bytes=_VMEM_LIMIT),
    )(x1f, x2f, w1m, w2m, scale, shift)

    # Channels-first throughout: this reshape is contiguous (free), no transpose needed.
    return out4.reshape(N, C_out, Ho, Wo)


def _reference(x, w1, w2, gamma, beta):
    """Pure-JAX f32 reference mirroring the PyTorch forward (training-mode biased BN)."""
    N, C_in, H, W = x.shape
    C_half = w1.shape[0]
    Ho, Wo = (H - 1) // 2 + 1, (W - 1) // 2 + 1
    x_pad = jnp.pad(x, ((0, 0), (0, 0), (0, 1), (0, 1)))
    x1 = x[:, :, 0:2 * Ho:2, 0:2 * Wo:2]
    x2 = x_pad[:, :, 1:1 + 2 * Ho:2, 1:1 + 2 * Wo:2]
    y1 = jnp.einsum('ncij,oc->noij', x1, w1.reshape(C_half, C_in))
    y2 = jnp.einsum('ncij,oc->noij', x2, w2.reshape(C_half, C_in))
    y = jnp.concatenate([y1, y2], axis=1)
    mean = jnp.mean(y, axis=(0, 2, 3), keepdims=True)
    var = jnp.mean((y - mean) ** 2, axis=(0, 2, 3), keepdims=True)
    yn = (y - mean) * jax.lax.rsqrt(var + BN_EPS)
    return yn * gamma.reshape(1, -1, 1, 1) + beta.reshape(1, -1, 1, 1)


if __name__ == "__main__":
    key = jax.random.PRNGKey(0)
    N, C_in, C_out, H, W = 2, 4, 8, 16, 16
    C_half = C_out // 2

    kx, kw1, kw2 = jax.random.split(key, 3)
    x = jax.random.normal(kx, (N, C_in, H, W), dtype=jnp.float32)
    # Deterministic parameter init (conv weights ~ 0.1*N(0,1); BN affine: weight=1, bias=0).
    w1 = 0.1 * jax.random.normal(kw1, (C_half, C_in, 1, 1), dtype=jnp.float32)
    w2 = 0.1 * jax.random.normal(kw2, (C_half, C_in, 1, 1), dtype=jnp.float32)
    gamma = jnp.ones((C_out,), dtype=jnp.float32)
    beta = jnp.zeros((C_out,), dtype=jnp.float32)

    out = factorized_reduce(x, w1, w2, gamma, beta)
    jax.block_until_ready(out)
    assert out.shape == (N, C_out, H // 2, W // 2), out.shape

    # Tight check: reference evaluated (in f32) on the same bf16-quantized inputs the kernel
    # declares as its compute dtype -> validates kernel arithmetic and the BN fold.
    xq = x.astype(jnp.bfloat16).astype(jnp.float32)
    w1q = w1.astype(jnp.bfloat16).astype(jnp.float32)
    w2q = w2.astype(jnp.bfloat16).astype(jnp.float32)
    err_q = float(jnp.max(jnp.abs(out - _reference(xq, w1q, w2q, gamma, beta))))
    assert err_q < 2e-3, err_q

    # Loose sanity check against the full-f32 reference (bounds the bf16 input quantization).
    err = float(jnp.max(jnp.abs(out - _reference(x, w1, w2, gamma, beta))))
    assert err < 1e-1, err

    # Second case: non-lane-multiple pixel count (30x30 -> P=225) exercising the
    # partial-tile masking / boundary-store path.
    x_b = jax.random.normal(kx, (N, C_in, 30, 30), dtype=jnp.float32)
    out_b = factorized_reduce(x_b, w1, w2, gamma, beta)
    jax.block_until_ready(out_b)
    assert out_b.shape == (N, C_out, 15, 15), out_b.shape
    xbq = x_b.astype(jnp.bfloat16).astype(jnp.float32)
    err_b = float(jnp.max(jnp.abs(out_b - _reference(xbq, w1q, w2q, gamma, beta))))
    assert err_b < 2e-3, err_b

    print("KERNEL_OK")
</pallas_src>

<mosaic_0001>
module attributes {stable_mosaic.version = 11 : i64} {
  func.func @_stats_kernel(%arg0: i32, %arg1: i32, %arg2: memref<1x4x64xbf16, #tpu.memory_space<vmem>>, %arg3: memref<1x4x64xbf16, #tpu.memory_space<vmem>>, %arg4: memref<4x4xbf16, #tpu.memory_space<vmem>>, %arg5: memref<4x4xbf16, #tpu.memory_space<vmem>>, %arg6: memref<1x2x4x1xf32, #tpu.memory_space<vmem>>, %arg7: memref<1x2x4x1xf32, #tpu.memory_space<vmem>>) attributes {dimension_semantics = [#tpu.dimension_semantics<parallel>, #tpu.dimension_semantics<arbitrary>], iteration_bounds = array<i64: 2, 1>, scalar_prefetch = 0 : i64, scratch_operands = 0 : i64, tpu.core_type = #tpu.core_type<tc>, window_params = [{transform_indices = @transform_0, window_bounds = array<i64: 1, 4, 64>}, {transform_indices = @transform_1, window_bounds = array<i64: 1, 4, 64>}, {pipeline_mode = #tpu.pipeline_mode<synchronous>, transform_indices = @transform_2, window_bounds = array<i64: 4, 4>}, {pipeline_mode = #tpu.pipeline_mode<synchronous>, transform_indices = @transform_3, window_bounds = array<i64: 4, 4>}, {transform_indices = @transform_4, window_bounds = array<i64: 1, 2, 4, 1>}, {transform_indices = @transform_5, window_bounds = array<i64: 1, 2, 4, 1>}]} {
    %c0_i32 = arith.constant 0 : i32
    %0 = arith.cmpi eq, %arg1, %c0_i32 : i32
    %1 = arith.extui %0 : i1 to i32
    %c0_i32_0 = arith.constant 0 : i32
    %2 = arith.cmpi ne, %1, %c0_i32_0 : i32
    scf.if %2 {
      %cst_46 = arith.constant 0.000000e+00 : f32
      %45 = vector.broadcast %cst_46 : f32 to vector<2x4x1xf32>
      %c0_47 = arith.constant 0 : index
      %c0_48 = arith.constant 0 : index
      %c0_49 = arith.constant 0 : index
      %c0_50 = arith.constant 0 : index
      %46 = vector.load %arg6[%c0_47, %c0_48, %c0_49, %c0_50] : memref<1x2x4x1xf32, #tpu.memory_space<vmem>>, vector<1x2x4x1xf32>
      %47 = vector.shape_cast %46 : vector<1x2x4x1xf32> to vector<2x4x1xf32>
      %48 = vector.shape_cast %45 : vector<2x4x1xf32> to vector<1x2x4x1xf32>
      tpu.vector_store %arg6[%c0_47, %c0_48, %c0_49, %c0_50], %48 {strides = array<i32>} : memref<1x2x4x1xf32, #tpu.memory_space<vmem>>, vector<1x2x4x1xf32>,
      %cst_51 = arith.constant 0.000000e+00 : f32
      %49 = vector.broadcast %cst_51 : f32 to vector<2x4x1xf32>
      %c0_52 = arith.constant 0 : index
      %c0_53 = arith.constant 0 : index
      %c0_54 = arith.constant 0 : index
      %c0_55 = arith.constant 0 : index
      %50 = vector.load %arg7[%c0_52, %c0_53, %c0_54, %c0_55] : memref<1x2x4x1xf32, #tpu.memory_space<vmem>>, vector<1x2x4x1xf32>
      %51 = vector.shape_cast %50 : vector<1x2x4x1xf32> to vector<2x4x1xf32>
      %52 = vector.shape_cast %49 : vector<2x4x1xf32> to vector<1x2x4x1xf32>
      tpu.vector_store %arg7[%c0_52, %c0_53, %c0_54, %c0_55], %52 {strides = array<i32>} : memref<1x2x4x1xf32, #tpu.memory_space<vmem>>, vector<1x2x4x1xf32>,
    } else {
    }
    %c0 = arith.constant 0 : index
    %c0_1 = arith.constant 0 : index
    %3 = vector.load %arg4[%c0, %c0_1] : memref<4x4xbf16, #tpu.memory_space<vmem>>, vector<4x4xbf16>
    %c0_2 = arith.constant 0 : index
    %c0_3 = arith.constant 0 : index
    %c0_4 = arith.constant 0 : index
    %4 = vector.load %arg2[%c0_2, %c0_3, %c0_4] : memref<1x4x64xbf16, #tpu.memory_space<vmem>>, vector<1x4x64xbf16>
    %5 = vector.shape_cast %4 : vector<1x4x64xbf16> to vector<4x64xbf16>
    %cst = arith.constant dense<0.000000e+00> : vector<4x64xf32>
    %6 = tpu.matmul %3, %5, %cst {dimension_numbers = #tpu.dot_dimension_numbers<[1], [0], [0], [1], [0, 0, 1, 1], [], []>} : vector<4x4xbf16>, vector<4x64xbf16>, vector<4x64xf32> -> vector<4x64xf32>
    %c0_5 = arith.constant 0 : index
    %c0_6 = arith.constant 0 : index
    %7 = vector.load %arg5[%c0_5, %c0_6] : memref<4x4xbf16, #tpu.memory_space<vmem>>, vector<4x4xbf16>
    %c0_7 = arith.constant 0 : index
    %c0_8 = arith.constant 0 : index
    %c0_9 = arith.constant 0 : index
    %8 = vector.load %arg3[%c0_7, %c0_8, %c0_9] : memref<1x4x64xbf16, #tpu.memory_space<vmem>>, vector<1x4x64xbf16>
    %9 = vector.shape_cast %8 : vector<1x4x64xbf16> to vector<4x64xbf16>
    %cst_10 = arith.constant dense<0.000000e+00> : vector<4x64xf32>
    %10 = tpu.matmul %7, %9, %cst_10 {dimension_numbers = #tpu.dot_dimension_numbers<[1], [0], [0], [1], [0, 0, 1, 1], [], []>} : vector<4x4xbf16>, vector<4x64xbf16>, vector<4x64xf32> -> vector<4x64xf32>
    %c0_11 = arith.constant 0 : index
    %c0_12 = arith.constant 0 : index
    %c0_13 = arith.constant 0 : index
    %c0_14 = arith.constant 0 : index
    %11 = vector.load %arg6[%c0_11, %c0_12, %c0_13, %c0_14] : memref<1x2x4x1xf32, #tpu.memory_space<vmem>>, vector<1x1x4x1xf32>
    %12 = vector.shape_cast %11 : vector<1x1x4x1xf32> to vector<4x1xf32>
    %cst_15 = arith.constant dense<0.000000e+00> : vector<4xf32>
    %13 = vector.multi_reduction <add>, %6, %cst_15 [1] : vector<4x64xf32> to vector<4xf32>
    %14 = vector.shape_cast %13 : vector<4xf32> to vector<4x1xf32>
    %15 = arith.addf %12, %14 : vector<4x1xf32>
    %c0_16 = arith.constant 0 : index
    %c0_17 = arith.constant 0 : index
    %c0_18 = arith.constant 0 : index
    %c0_19 = arith.constant 0 : index
    %16 = vector.load %arg6[%c0_16, %c0_17, %c0_18, %c0_19] : memref<1x2x4x1xf32, #tpu.memory_space<vmem>>, vector<1x1x4x1xf32>
    %17 = vector.shape_cast %16 : vector<1x1x4x1xf32> to vector<4x1xf32>
    %18 = vector.shape_cast %15 : vector<4x1xf32> to vector<1x1x4x1xf32>
    tpu.vector_store %arg6[%c0_16, %c0_17, %c0_18, %c0_19], %18 {strides = array<i32>} : memref<1x2x4x1xf32, #tpu.memory_space<vmem>>, vector<1x1x4x1xf32>,
    %c0_20 = arith.constant 0 : index
    %c1 = arith.constant 1 : index
    %c0_21 = arith.constant 0 : index
    %c0_22 = arith.constant 0 : index
    %19 = vector.load %arg6[%c0_20, %c1, %c0_21, %c0_22] : memref<1x2x4x1xf32, #tpu.memory_space<vmem>>, vector<1x1x4x1xf32>
    %20 = vector.shape_cast %19 : vector<1x1x4x1xf32> to vector<4x1xf32>
    %cst_23 = arith.constant dense<0.000000e+00> : vector<4xf32>
    %21 = vector.multi_reduction <add>, %10, %cst_23 [1] : vector<4x64xf32> to vector<4xf32>
    %22 = vector.shape_cast %21 : vector<4xf32> to vector<4x1xf32>
    %23 = arith.addf %20, %22 : vector<4x1xf32>
    %c0_24 = arith.constant 0 : index
    %c1_25 = arith.constant 1 : index
    %c0_26 = arith.constant 0 : index
    %c0_27 = arith.constant 0 : index
    %24 = vector.load %arg6[%c0_24, %c1_25, %c0_26, %c0_27] : memref<1x2x4x1xf32, #tpu.memory_space<vmem>>, vector<1x1x4x1xf32>
    %25 = vector.shape_cast %24 : vector<1x1x4x1xf32> to vector<4x1xf32>
    %26 = vector.shape_cast %23 : vector<4x1xf32> to vector<1x1x4x1xf32>
    tpu.vector_store %arg6[%c0_24, %c1_25, %c0_26, %c0_27], %26 {strides = array<i32>} : memref<1x2x4x1xf32, #tpu.memory_space<vmem>>, vector<1x1x4x1xf32>,
    %c0_28 = arith.constant 0 : index
    %c0_29 = arith.constant 0 : index
    %c0_30 = arith.constant 0 : index
    %c0_31 = arith.constant 0 : index
    %27 = vector.load %arg7[%c0_28, %c0_29, %c0_30, %c0_31] : memref<1x2x4x1xf32, #tpu.memory_space<vmem>>, vector<1x1x4x1xf32>
    %28 = vector.shape_cast %27 : vector<1x1x4x1xf32> to vector<4x1xf32>
    %29 = arith.mulf %6, %6 : vector<4x64xf32>
    %cst_32 = arith.constant dense<0.000000e+00> : vector<4xf32>
    %30 = vector.multi_reduction <add>, %29, %cst_32 [1] : vector<4x64xf32> to vector<4xf32>
    %31 = vector.shape_cast %30 : vector<4xf32> to vector<4x1xf32>
    %32 = arith.addf %28, %31 : vector<4x1xf32>
    %c0_33 = arith.constant 0 : index
    %c0_34 = arith.constant 0 : index
    %c0_35 = arith.constant 0 : index
    %c0_36 = arith.constant 0 : index
    %33 = vector.load %arg7[%c0_33, %c0_34, %c0_35, %c0_36] : memref<1x2x4x1xf32, #tpu.memory_space<vmem>>, vector<1x1x4x1xf32>
    %34 = vector.shape_cast %33 : vector<1x1x4x1xf32> to vector<4x1xf32>
    %35 = vector.shape_cast %32 : vector<4x1xf32> to vector<1x1x4x1xf32>
    tpu.vector_store %arg7[%c0_33, %c0_34, %c0_35, %c0_36], %35 {strides = array<i32>} : memref<1x2x4x1xf32, #tpu.memory_space<vmem>>, vector<1x1x4x1xf32>,
    %c0_37 = arith.constant 0 : index
    %c1_38 = arith.constant 1 : index
    %c0_39 = arith.constant 0 : index
    %c0_40 = arith.constant 0 : index
    %36 = vector.load %arg7[%c0_37, %c1_38, %c0_39, %c0_40] : memref<1x2x4x1xf32, #tpu.memory_space<vmem>>, vector<1x1x4x1xf32>
    %37 = vector.shape_cast %36 : vector<1x1x4x1xf32> to vector<4x1xf32>
    %38 = arith.mulf %10, %10 : vector<4x64xf32>
    %cst_41 = arith.constant dense<0.000000e+00> : vector<4xf32>
    %39 = vector.multi_reduction <add>, %38, %cst_41 [1] : vector<4x64xf32> to vector<4xf32>
    %40 = vector.shape_cast %39 : vector<4xf32> to vector<4x1xf32>
    %41 = arith.addf %37, %40 : vector<4x1xf32>
    %c0_42 = arith.constant 0 : index
    %c1_43 = arith.constant 1 : index
    %c0_44 = arith.constant 0 : index
    %c0_45 = arith.constant 0 : index
    %42 = vector.load %arg7[%c0_42, %c1_43, %c0_44, %c0_45] : memref<1x2x4x1xf32, #tpu.memory_space<vmem>>, vector<1x1x4x1xf32>
    %43 = vector.shape_cast %42 : vector<1x1x4x1xf32> to vector<4x1xf32>
    %44 = vector.shape_cast %41 : vector<4x1xf32> to vector<1x1x4x1xf32>
    tpu.vector_store %arg7[%c0_42, %c1_43, %c0_44, %c0_45], %44 {strides = array<i32>} : memref<1x2x4x1xf32, #tpu.memory_space<vmem>>, vector<1x1x4x1xf32>,
    return
  }
  func.func @transform_0(%arg0: i32, %arg1: i32) -> (i32, i32, i32) {
    %c0_i32 = arith.constant 0 : i32
    %c0_i32_0 = arith.constant 0 : i32
    return %arg0, %c0_i32, %arg1 : i32, i32, i32
  }
  func.func @transform_1(%arg0: i32, %arg1: i32) -> (i32, i32, i32) {
    %c0_i32 = arith.constant 0 : i32
    %c0_i32_0 = arith.constant 0 : i32
    return %arg0, %c0_i32, %arg1 : i32, i32, i32
  }
  func.func @transform_2(%arg0: i32, %arg1: i32) -> (i32, i32) {
    %c0_i32 = arith.constant 0 : i32
    %c0_i32_0 = arith.constant 0 : i32
    %c0_i32_1 = arith.constant 0 : i32
    return %c0_i32, %c0_i32_0 : i32, i32
  }
  func.func @transform_3(%arg0: i32, %arg1: i32) -> (i32, i32) {
    %c0_i32 = arith.constant 0 : i32
    %c0_i32_0 = arith.constant 0 : i32
    %c0_i32_1 = arith.constant 0 : i32
    return %c0_i32, %c0_i32_0 : i32, i32
  }
  func.func @transform_4(%arg0: i32, %arg1: i32) -> (i32, i32, i32, i32) {
    %c0_i32 = arith.constant 0 : i32
    %c0_i32_0 = arith.constant 0 : i32
    %c0_i32_1 = arith.constant 0 : i32
    %c0_i32_2 = arith.constant 0 : i32
    return %arg0, %c0_i32, %c0_i32_0, %c0_i32_1 : i32, i32, i32, i32
  }
  func.func @transform_5(%arg0: i32, %arg1: i32) -> (i32, i32, i32, i32) {
    %c0_i32 = arith.constant 0 : i32
    %c0_i32_0 = arith.constant 0 : i32
    %c0_i32_1 = arith.constant 0 : i32
    %c0_i32_2 = arith.constant 0 : i32
    return %arg0, %c0_i32, %c0_i32_0, %c0_i32_1 : i32, i32, i32, i32
  }
}

</mosaic_0001>

<bundles_post_ra>
// kernel: tpu_custom_call.1
= control target key start
LH: loop header
LB: loop body
LE: loop exit
PB: predicated region body
PF: predicated region fallthrough
CT: control target
= control target key end

     0   :  { %11 = vsyncpa [#allocation3], 0  ;;  %s981_s0 = inlined_call_operand.hbm [shape: bf16[2,4,64], index: 0, kind: input, shape index: {}]   ;;  %s982_s1 = inlined_call_operand.hbm [shape: bf16[2,4,64], index: 1, kind: input, shape index: {}]   ;;  %s983_s2 = inlined_call_operand.vmem [shape: bf16[4,4], index: 2, kind: input, shape index: {}]   ;;  %s984_s3 = inlined_call_operand.vmem [shape: bf16[4,4], index: 3, kind: input, shape index: {}]   ;;  %s985_s4 = inlined_call_operand.vmem [shape: f32[2,2,4,1], index: 4, kind: output, shape index: {0}]   ;;  %s986_s5 = inlined_call_operand.vmem [shape: f32[2,2,4,1], index: 5, kind: output, shape index: {1}]  }
   0x1   :  { %13 = vsyncpa [#allocation3 + $0x1], 0 }
   0x2   :  { %14 = vsyncpa [#allocation5], 0 }
   0x3   :  { %16 = vsyncpa [#allocation5 + $0x1], 0  ;;  %s830_s18 = smov 0   ;;  %s832_s19 = smov 0  }
   0x4   :  { %s834_s20 = smov 0   ;;  %s836_s21 = smov 0  }
   0x5   :  { %s838_s22 = smov 0   ;;  %s840_s23 = smov 0  }
   0x6 LB: > { %s581_s24 = sadd.s32 4294967295, %s794_s23   ;;  %s34_s25 = sadd.s32 1, %s790_s22  ;;  %s794_s23 = sphi %s840_s23, %s22_s23   ;;  %s790_s22 = sphi %s838_s22, %s995_s22   ;;  %s786_s21 = sphi %s836_s21, %s994_s21   ;;  %s782_s20 = sphi %s834_s20, %s993_s20   ;;  %s778_s19 = sphi %s832_s19, %s992_s19   ;;  %s774_s18 = sphi %s830_s18, %s991_s18  }
   0x7   : > { %p36_p0 = scmp.ge.s32.totalorder %s34_s25, 2  ;;  %s43_s26 = sadd.s32 1, %s782_s20 }
   0x8   : > { %p50_p1 = scmp.ne.s32.totalorder %s782_s20, %s778_s19  ;;  %p51_p2 = scmp.eq.s32.totalorder %s794_s23, 0 }
   0x9   : > { %s997_s25 = smov (%p36_p0, %s34_s25), 0  ;;  %p56_p4 = scmp.ne.s32.totalorder %s778_s19, %s774_s18 }
   0xa   : > { %p866_p3 = por %p51_p2, %p50_p1  ;;  %s38_s28 = ssub.s32 %s790_s22, %s997_s25 }
   0xb   : > { %p57_p5 = scmp.eq.s32.totalorder %s581_s24, 0  ;;  %p41_p6 = scmp.eq.s32.totalorder %s38_s28, 0 }
   0xc   : > { %p633_p8 = scmp.lt.s32.totalorder %s794_s23, 2  ;;  %s882_s6 = sand.u32 1, %s782_s20  }
   0xd   : > { %p873_p7 = por %p57_p5, %p56_p4  ;;  %s586_s7 = sshll.u32 %s790_s22, 5 }
   0xe   : > { %s879_s30 = scalar_select %p41_p6, %s782_s20, %s43_s26  }
   0xf   : > { %s585_s8 = sshll.u32 %s882_s6, 1  ;;  %s218_s11 = scalar_lea.hbm %s981_s0, %s586_s7 }
  0x10   : > { %s212_s12 = scalar_lea.vmem [#allocation2], %s585_s8  ;;  %p891_p9 = pnand %p633_p8, %p866_p3 }
  0x11   : > { %s220_s13 = sshll.u32 %s212_s12, 4  ;;  %p589_p10 = scmp.ge.s32.totalorder %s794_s23, 1  ;;  %s221_s13 = int_to_ptr.vmem [resolvable:$true] %s220_s13 }
  0x12   : > { %p244_p11 = scmp.lt.s32.totalorder %s794_s23, 3  ;;  %s209_s15 = scalar_lea.sflag [#allocation3], %s882_s6 }
  0x13   : > { %p686_p12 = pneg %p891_p9  ;;  %s697_s16 = scalar_lea.vmem %s221_s13, 32 }
  0x14   : > { %p698_p13 = scmp.ne.s32.totalorder %s221_s13, %s697_s16  ;;  %s796_s17 = smov [#allocation2]  }
  0x15   : > { %s702_s18 = sshll.u32 %s796_s17, 4  ;;  %s703_s18 = int_to_ptr.vmem [resolvable:$false] %s702_s18 }
  0x16   : > { %p700_p0 = pnand %p698_p13, %p686_p12  ;;  %s704_s24 = scalar_lea.vmem %s703_s18, 64 }
  0x17   : > { %p705_p2 = scmp.lt.s32.totalorder %s221_s13, %s703_s18  ;;  %p706_p3 = scmp.lt.s32.totalorder %s704_s24, %s697_s16 }
  0x18   : > { %p701_p1 = pneg %p700_p0 }
  0x19   : > { %p707_p4 = por %p706_p3, %p705_p2 }
  0x1b   : > { %p708_p5 = pnand %p707_p4, %p701_p1 }
  0x1d   : > { %711 = shalt.err (!%p708_p5)
}
  0x1e   : > { %629 = dma.hbm_to_vmem [thread:$0]  (!%p891_p9), %s218_s11, 32, %s221_s13, %s209_s15  }
  0x1f   : > { %p909_p6 = pnand %p589_p10, %p244_p11  ;;  %s237_s9 = scalar_lea.hbm %s982_s1, %s586_s7 }
  0x20   : > { %s231_s10 = scalar_lea.vmem [#allocation4], %s585_s8  ;;  %s228_s16 = scalar_lea.sflag [#allocation5], %s882_s6 }
  0x21   : > { %s239_s12 = sshll.u32 %s231_s10, 4  ;;  %s797_s11 = smov [#allocation4]   ;;  %s240_s12 = int_to_ptr.vmem [resolvable:$true] %s239_s12 }
  0x22   : > { %s725_s17 = scalar_lea.vmem %s240_s12, 32  ;;  %s730_s13 = sshll.u32 %s797_s11, 4  ;;  %s731_s13 = int_to_ptr.vmem [resolvable:$false] %s730_s13 }
  0x23   : > { %p726_p8 = scmp.ne.s32.totalorder %s240_s12, %s725_s17  ;;  %s732_s15 = scalar_lea.vmem %s731_s13, 64 }
  0x24   : > { %p733_p10 = scmp.lt.s32.totalorder %s240_s12, %s731_s13  ;;  %p734_p11 = scmp.lt.s32.totalorder %s732_s15, %s725_s17 }
  0x25   : > { %p728_p13 = pnand %p726_p8, %p686_p12 }
  0x26   : > { %p735_p1 = por %p734_p11, %p733_p10 }
  0x27   : > { %p729_p0 = pneg %p728_p13 }
  0x29   : > { %p736_p2 = pnand %p735_p1, %p729_p0 }
  0x2b   : > { %739 = shalt.err (!%p736_p2)
}
  0x2c   : > { %632 = dma.hbm_to_vmem [thread:$0]  (!%p891_p9), %s237_s9, 32, %s240_s12, %s228_s16  }
  0x2d   : > { %248 = sbr.rel (%p909_p6) target bundleno = 400 (0x190), region = 36  ;;  %s250_s6 = sand.u32 (!%p909_p6), 1, %s778_s19  }
  0x2e   : > { %s590_s7 = sshll.u32 (!%p909_p6), %s250_s6, 1  ;;  %s251_s8 = scalar_lea.sflag (!%p909_p6), [#allocation3], %s250_s6 }
  0x2f   : > { %s254_s18 = scalar_lea.vmem (!%p909_p6), [#allocation2], %s590_s7 }
  0x32   : > { %765 = dma.done.wait (%p873_p7), %s251_s8, 32  }
  0x33   : > { %767 = vsyncadd (%p873_p7), %s251_s8, 4294967264  ;;  %s260_s24 = scalar_lea.sflag [#allocation5], %s250_s6  ;;  %s263_s27 = scalar_lea.vmem [#allocation4], %s590_s7 }
  0x34   : > { %769 = dma.done.wait (%p873_p7), %s260_s24, 32  }
  0x35   : > { %771 = vsyncadd (%p873_p7), %s260_s24, 4294967264  ;;  %v798_v0 = vmov 0.0   ;;  %vm799_vm0 = vmmov 0   ;;  %vm326_vm1 = vcmask 1041408   ;;  %v321_v1 = vld [vmem:[%s254_s18] sm:$0x3] }
  0x36   : > { %610 = vmatprep.subr.bf16.mxu0 %v798_v0  ;;  %616 = vmatprep.subr.bf16.mxu1 %v798_v0  ;;  %v371_v2 = vld [vmem:[%s263_s27] sm:$0x3]  ;;  %v328_v3 = vsel %vm326_vm1, %v321_v1, 0  ;;  %v320_v5 = vld [vmem:[%s983_s2] sm:$0x3]  ;;  %vm322_vm2 = vcmask 31744  }
  0x37   : > { %612 = vmatprep.mubr.msk.bf16.mxu0 %vm799_vm0, %v798_v0  ;;  %618 = vmatprep.mubr.msk.bf16.mxu1 %vm799_vm0, %v798_v0  ;;  %v376_v4 = vsel %vm326_vm1, %v371_v2, 0  ;;  %v370_v6 = vld [vmem:[%s984_s3] sm:$0x3]  ;;  %p300_p7 = scmp.lt.s32.totalorder %s786_s21, 1  ;;  %vm315_vm3 = vcmask 3072   ;;  %vm419_vm4 = vcmask 519168  }
  0x38   : > { %611 = vmatpush3.bf16.msra.mxu0 %v328_v3  ;;  %617 = vmatpush3.bf16.msra.mxu1 %v376_v4 }
  0x39   : > { %s999_s21 = smov (!%p300_p7, %s786_s21), 1 }
  0x3a   : > { %s604_s9 = sshll.u32 %s999_s21, 3 }
  0x3b   : > { %613 = vmatmul.mubr.msk.bf16.vlgmr.msra.gmra.mxu0 %vm322_vm2, %v320_v5  ;;  %619 = vmatmul.mubr.msk.bf16.vlgmr.msra.gmra.mxu1 %vm322_vm2, %v370_v6  ;;  %s944_s16 = scalar_lea.vmem %s985_s4, %s604_s9  ;;  %s309_s11 = scalar_lea.vmem %s986_s5, %s604_s9 }
  0x3c   : > { %316 = vst.msk [vmem:[%s944_s16] sm:$0xf] %vm315_vm3, %v798_v0  ;;  %317 = vst.msk [vmem:[%s944_s16 + $0x4] sm:$0xf] %vm315_vm3, %v798_v0 }
  0x3d   : > { %318 = vst.msk [vmem:[%s309_s11] sm:$0xf] %vm315_vm3, %v798_v0  ;;  %319 = vst.msk [vmem:[%s309_s11 + $0x4] sm:$0xf] %vm315_vm3, %v798_v0 }
  0x43   : > { %v418_v21 = vld [vmem:[%s944_s16] sm:$0xf]  ;;  %v598_v26 = vld [vmem:[%s944_s16 + $0x4] sm:$0xf] }
  0x44   : > { %v433_v23 = vld [vmem:[%s309_s11] sm:$0xf]  ;;  %v600_v29 = vld [vmem:[%s309_s11 + $0x4] sm:$0xf] }
  0xfb   : > { %v364_v7 = vpop.f32.mrf.mxu0  ;;  %v412_v8 = vpop.f32.mrf.mxu1 }
  0xfc   : > { %v442_v9 = vmul.f32 %v412_v8, %v412_v8  ;;  %v420_v10 = vsel %vm419_vm4, %v364_v7, 0.0  ;;  %v434_v11 = vmul.f32 %v364_v7, %v364_v7  ;;  %v428_v15 = vsel %vm419_vm4, %v412_v8, 0.0 }
  0xfd   : > { %v620_v12 = vpop.f32.mrf.mxu1  ;;  %421 = vadd.xlane.f32.xlu0 %v420_v10  ;;  %v614_v13 = vpop.f32.mrf.mxu0 }
  0xfe   : > { %v435_v14 = vsel %vm419_vm4, %v434_v11, 0.0  ;;  %v443_v18 = vsel %vm419_vm4, %v442_v9, 0.0 }
  0xff   : > { %v415_v16 = vpop.f32.mrf.mxu1  ;;  %436 = vadd.xlane.f32.xlu1 %v435_v14  ;;  %v367_v17 = vpop.f32.mrf.mxu0 }
 0x101   : > { %v621_v19 = vpop.f32.mrf.mxu1  ;;  %429 = vadd.xlane.f32.xlu0 %v428_v15  ;;  %v615_v20 = vpop.f32.mrf.mxu0 }
 0x103   : > { %444 = vadd.xlane.f32.xlu1 %v443_v18 }
 0x186   : > { %v422_v22 = vpop.xlane.xlu0 %421 }
 0x187   : > { %v423_v24 = vadd.f32 %v422_v22, %v418_v21 }
 0x188   : > { %v437_v25 = vpop.xlane.xlu1 %436 }
 0x189   : > { %425 = vst.msk [vmem:[%s944_s16] sm:$0xf] %vm315_vm3, %v423_v24  ;;  %v438_v27 = vadd.f32 %v437_v25, %v433_v23 }
 0x18a   : > { %v430_v28 = vpop.xlane.xlu0 %429 }
 0x18b   : > { %439 = vst.msk [vmem:[%s309_s11] sm:$0xf] %vm315_vm3, %v438_v27  ;;  %v431_v30 = vadd.f32 %v598_v26, %v430_v28 }
 0x18c   : > { %v445_v31 = vpop.xlane.xlu1 %444 }
 0x18d   : > { %599 = vst.msk [vmem:[%s944_s16 + $0x4] sm:$0xf] %vm315_vm3, %v431_v30  ;;  %v446_v32 = vadd.f32 %v600_v29, %v445_v31 }
 0x18f   : > { %601 = vst.msk [vmem:[%s309_s11 + $0x4] sm:$0xf] %vm315_vm3, %v446_v32 }
 0x190 PF: > { %s22_s23 = sadd.s32 1, %s794_s23   ;;  %s991_s18 = smov %s778_s19 }
 0x191   : > { %p19_p9 = scmp.ge.s32.totalorder %s22_s23, 4   ;;  %s992_s19 = smov %s782_s20 }
 0x192   : > { %s993_s20 = smov %s879_s30  ;;  %s994_s21 = smov %s790_s22 }
 0x193   : > { %s995_s22 = smov %s997_s25  ;;  %21 = sbr.rel (!%p19_p9) target bundleno = 6 (0x6), region = 107 }
 0x198   :  { %485 = vsyncpa [#allocation3], 1 }
 0x199   :  { %487 = vsyncpa [#allocation3 + $0x1], 1 }
 0x19a   :  { %488 = vsyncpa [#allocation5], 1 }
 0x19b   :  { %490 = vsyncpa [#allocation5 + $0x1], 1 }

</bundles_post_ra>
